<compile_context>
chip_gen: v7x
topology: tpu7x:2x2x1
jax: 0.10.0
libtpu: 0.0.40
codegen_flags: <defaults>
</compile_context>

<pallas_src>
import functools
import math

import jax
import jax.numpy as jnp
from jax.experimental import pallas as pl
from jax.experimental.pallas import tpu as pltpu


def _conv_bn_kernel(x_ref, w_ref, shift_ref, mask_ref, o_ref, *, KW, pad_w, mxu_dtype):
    """relu -> fused 1-D conv along W (single MXU dot) -> folded BN affine.

    x_ref:     (1, Cin, TP)      flattened (h, w) positions in the lane axis;
                                 TP % W == 0 and every block starts on a row boundary.
    w_ref:     (Cout, KW*Cin)    conv weights with BN scale folded in (mxu_dtype).
    shift_ref: (Cout, 1)         folded conv-bias + BN shift (f32).
    mask_ref:  (KW, TP)          precomputed per-tap boundary masks (0/1, f32).
    o_ref:     (1, Cout, TP)
    """
    x = jnp.maximum(x_ref[0], 0.0)                       # ReLU before conv (VPU)
    cin, tp = x.shape
    mask = mask_ref[...]                                 # resident, identical per block

    taps = []
    for kw in range(KW):                                 # KW tiny & static -> unrolled
        d = kw - pad_w                                   # tap offset: out[w] uses x[w + d]
        if d == 0:
            xs = x
        elif d > 0:
            # roll left by d; lanes that wrapped / crossed a row boundary are exactly
            # the positions PyTorch's zero padding would feed -> multiply by 0/1 mask.
            xs = pltpu.roll(x, tp - d, axis=1) * mask[kw:kw + 1, :]
        else:
            xs = pltpu.roll(x, -d, axis=1) * mask[kw:kw + 1, :]
        taps.append(xs)

    # One (Cout, KW*Cin) @ (KW*Cin, TP) matmul in mxu_dtype, f32 accumulation.
    stacked = jnp.concatenate(taps, axis=0).astype(mxu_dtype)
    acc = jax.lax.dot_general(w_ref[...], stacked,
                              (((1,), (0,)), ((), ())),
                              preferred_element_type=jnp.float32)   # (Cout, TP)

    o_ref[0] = (acc + shift_ref[...]).astype(o_ref.dtype)


def _vmem_capacity_bytes():
    """Physical VMEM per core, with a conservative (v7x) fallback."""
    try:
        cap = int(pltpu.get_tpu_info().vmem_capacity_bytes)
        if cap > 0:
            return cap
    except Exception:
        pass
    return 64 * 1024 * 1024


def _pick_block_lanes(hw, w, n, cin, cout, itemsize, mxu_itemsize, kw,
                      vmem_budget, min_lanes=2048, target_steps=8):
    """VMEM- and pipeline-aware block length along the flattened H*W axis.

    The block must contain whole W-rows (so the roll/mask boundary logic is exact),
    divide H*W, and be a multiple of 128 lanes unless it spans the whole axis.
    """
    lcm = w * 128 // math.gcd(w, 128)
    if hw % lcm != 0:
        return hw                      # single full-extent block (always legal)

    # Approximate VMEM bytes needed per output lane:
    #   double-buffered activation/output blocks + in-kernel temporaries
    #   (relu'd x, KW rolled/masked taps, bf16 stacked copy, f32 accumulator).
    per_lane = (2 * (cin + cout) * itemsize            # pipelined in/out blocks
                + (kw + 1) * cin * itemsize            # x + per-tap temporaries
                + kw * cin * mxu_itemsize              # stacked MXU operand
                + cout * 4)                            # f32 accumulator
    lane_cap = max(lcm, vmem_budget // per_lane)

    m = hw // lcm
    cands = [lcm * d for d in range(1, m + 1) if m % d == 0]
    feasible = [t for t in cands if t <= lane_cap] or [cands[0]]

    # Largest block that still leaves >= target_steps grid steps (DMA pipelining,
    # even split across v7x's two TensorCores); otherwise the largest feasible.
    good = [t for t in feasible if n * (hw // t) >= target_steps]
    tp = max(good) if good else max(feasible)

    # Never run with tiny blocks (per-step overhead ~0.35 us) if we can avoid it.
    if tp < min_lanes:
        bigger = [t for t in feasible if t >= min_lanes]
        if bigger:
            tp = min(bigger)
    return tp


def conv_op(x_nchw, weight, bias, gamma, beta, running_mean, running_var,
            eps=1e-5, block_lanes=None, mxu_dtype=jnp.bfloat16):
    """Eval-mode forward of the SNAS Conv op: relu -> conv2d -> BN (dropout = id).

    x_nchw : (N, Cin, H, W) float32
    weight : (Cout, Cin, 1, KW)  (PyTorch conv weight layout)
    """
    N, Cin, H, W = x_nchw.shape
    Cout, Cin_w, KH, KW = weight.shape
    assert KH == 1 and Cin_w == Cin, "kernel_size[0] must be 1 for this op"
    assert KW % 2 == 1, "only 'same' padding along W (module default) is supported"
    pad_w = (KW - 1) // 2              # == padding[1] for the module default (0, 1)

    # --- fold BN (running stats) + conv bias into the weights / one shift vector ---
    scale = gamma / jnp.sqrt(running_var + eps)                           # (Cout,)
    w3 = jnp.transpose(weight[:, :, 0, :], (0, 2, 1))                     # (Cout, KW, Cin)
    wf = (w3 * scale[:, None, None]).reshape(Cout, KW * Cin).astype(mxu_dtype)
    shift = ((bias - running_mean) * scale + beta).reshape(Cout, 1).astype(jnp.float32)

    # --- lane-dense, transpose-free layout: NCHW -> (N, Cin, H*W) is a free reshape ---
    HW = H * W
    x3 = x_nchw.reshape(N, Cin, HW)
    itemsize = x3.dtype.itemsize
    mxu_itemsize = jnp.dtype(mxu_dtype).itemsize

    # Per-generation VMEM limit: ~48 MiB on v7x (64 MiB physical, scratch headroom),
    # 64 MiB on v5e/v6e (128 MiB physical).
    vmem_cap = _vmem_capacity_bytes()
    vmem_limit = min(max(vmem_cap - 16 * 1024 * 1024, 32 * 1024 * 1024),
                     64 * 1024 * 1024)

    if block_lanes is None:
        TP = _pick_block_lanes(HW, W, N, Cin, Cout, itemsize, mxu_itemsize, KW,
                               vmem_budget=vmem_limit // 2)
    else:
        TP = block_lanes               # test-only override
        assert HW % TP == 0 and TP % W == 0 and (TP % 128 == 0 or TP == HW), \
            "block_lanes must divide H*W, contain whole W-rows, and be lane-aligned"

    # Per-tap boundary masks: identical for every block (TP % W == 0), so computed
    # once here instead of an iota + modulo + compares every grid step.
    pos = jnp.arange(TP, dtype=jnp.int32) % W
    rows = []
    for kw in range(KW):
        d = kw - pad_w
        if d == 0:
            rows.append(jnp.ones((TP,), jnp.float32))
        elif d > 0:
            rows.append((pos < W - d).astype(jnp.float32))
        else:
            rows.append((pos >= -d).astype(jnp.float32))
    mask = jnp.stack(rows, axis=0)                                        # (KW, TP)

    cost = pl.CostEstimate(
        flops=2 * N * Cout * Cin * KW * HW,
        transcendentals=0,
        bytes_accessed=(Cin + Cout) * N * HW * itemsize
        + Cout * KW * Cin * mxu_itemsize + Cout * 4 + KW * TP * 4,
    )

    kernel = functools.partial(_conv_bn_kernel, KW=KW, pad_w=pad_w,
                               mxu_dtype=mxu_dtype)
    out = pl.pallas_call(
        kernel,
        out_shape=jax.ShapeDtypeStruct((N, Cout, HW), x_nchw.dtype),
        grid=(N, HW // TP),
        in_specs=[
            pl.BlockSpec((1, Cin, TP), lambda n, j: (n, 0, j)),       # activations
            pl.BlockSpec((Cout, KW * Cin), lambda n, j: (0, 0)),      # folded weights
            pl.BlockSpec((Cout, 1), lambda n, j: (0, 0)),             # folded shift
            pl.BlockSpec((KW, TP), lambda n, j: (0, 0)),              # boundary masks
        ],
        out_specs=pl.BlockSpec((1, Cout, TP), lambda n, j: (n, 0, j)),
        compiler_params=pltpu.CompilerParams(
            dimension_semantics=("parallel", "parallel"),  # shards across v7x's 2 TCs
            vmem_limit_bytes=vmem_limit,
        ),
        cost_estimate=cost,
    )(x3, wf, shift, mask)

    # TODO(synk): training-mode dropout (p=0.3) and batch-statistics BN are omitted;
    # this kernel implements the eval-mode forward only.
    return out.reshape(N, Cout, H, W)                                  # free reshape


def _reference(x_nchw, weight, bias, gamma, beta, running_mean, running_var, eps=1e-5):
    """Pure-JAX reference: relu -> conv2d(pad=(0,pad_w)) -> batchnorm(eval)."""
    KW = weight.shape[-1]
    pad_w = (KW - 1) // 2
    x = jnp.maximum(x_nchw, 0.0)
    y = jax.lax.conv_general_dilated(
        x, weight,
        window_strides=(1, 1),
        padding=((0, 0), (pad_w, pad_w)),
        dimension_numbers=("NCHW", "OIHW", "NCHW"),
    ) + bias[None, :, None, None]
    scale = gamma / jnp.sqrt(running_var + eps)
    shift = beta - running_mean * scale
    return y * scale[None, :, None, None] + shift[None, :, None, None]


if __name__ == "__main__":
    key = jax.random.PRNGKey(0)
    k_x, k_w, k_b, k_g, k_be, k_m, k_v = jax.random.split(key, 7)

    N, Cin, H, W = 2, 4, 16, 16
    Cout, KW = 8, 3

    x = jax.random.normal(k_x, (N, Cin, H, W), jnp.float32)
    weight = jax.random.normal(k_w, (Cout, Cin, 1, KW), jnp.float32) * 0.1
    bias = jax.random.normal(k_b, (Cout,), jnp.float32) * 0.1
    gamma = 1.0 + 0.1 * jax.random.normal(k_g, (Cout,), jnp.float32)
    beta = 0.1 * jax.random.normal(k_be, (Cout,), jnp.float32)
    running_mean = 0.1 * jax.random.normal(k_m, (Cout,), jnp.float32)
    running_var = 1.0 + 0.1 * jax.nn.softplus(jax.random.normal(k_v, (Cout,), jnp.float32))

    ref = _reference(x, weight, bias, gamma, beta, running_mean, running_var)

    # 1) Production path: auto block sizing (VMEM/pipeline aware), bf16 MXU operands.
    out = conv_op(x, weight, bias, gamma, beta, running_mean, running_var)
    out = jax.block_until_ready(out)
    assert out.shape == (N, Cout, H, W), out.shape
    assert jnp.allclose(out, ref, atol=3e-2, rtol=3e-2), \
        float(jnp.max(jnp.abs(out - ref)))

    # 2) Structural check: f32 MXU operands -> must match the reference tightly.
    out_f32 = conv_op(x, weight, bias, gamma, beta, running_mean, running_var,
                      mxu_dtype=jnp.float32)
    out_f32 = jax.block_until_ready(out_f32)
    assert jnp.allclose(out_f32, ref, atol=1e-4, rtol=1e-4), \
        float(jnp.max(jnp.abs(out_f32 - ref)))

    # 3) Test-only tiled path: block_lanes=128 -> grid (2, 2); exercises the
    #    multi-block pipeline and the roll/mask row-boundary logic.
    out_tiled = conv_op(x, weight, bias, gamma, beta, running_mean, running_var,
                        block_lanes=128, mxu_dtype=jnp.float32)
    out_tiled = jax.block_until_ready(out_tiled)
    assert jnp.allclose(out_tiled, ref, atol=1e-4, rtol=1e-4), \
        float(jnp.max(jnp.abs(out_tiled - ref)))

    print("KERNEL_OK")
</pallas_src>

<mosaic_0001>
module attributes {stable_mosaic.version = 11 : i64} {
  func.func @_conv_bn_kernel(%arg0: i32, %arg1: i32, %arg2: memref<1x4x256xf32, #tpu.memory_space<vmem>>, %arg3: memref<8x12xbf16, #tpu.memory_space<vmem>>, %arg4: memref<8x1xf32, #tpu.memory_space<vmem>>, %arg5: memref<3x256xf32, #tpu.memory_space<vmem>>, %arg6: memref<1x8x256xf32, #tpu.memory_space<vmem>>) attributes {dimension_semantics = [#tpu.dimension_semantics<parallel>, #tpu.dimension_semantics<parallel>], iteration_bounds = array<i64: 2, 1>, scalar_prefetch = 0 : i64, scratch_operands = 0 : i64, tpu.core_type = #tpu.core_type<tc>, window_params = [{transform_indices = @transform_0, window_bounds = array<i64: 1, 4, 256>}, {pipeline_mode = #tpu.pipeline_mode<synchronous>, transform_indices = @transform_1, window_bounds = array<i64: 8, 12>}, {pipeline_mode = #tpu.pipeline_mode<synchronous>, transform_indices = @transform_2, window_bounds = array<i64: 8, 1>}, {pipeline_mode = #tpu.pipeline_mode<synchronous>, transform_indices = @transform_3, window_bounds = array<i64: 3, 256>}, {transform_indices = @transform_4, window_bounds = array<i64: 1, 8, 256>}]} {
    %c0 = arith.constant 0 : index
    %c0_0 = arith.constant 0 : index
    %c0_1 = arith.constant 0 : index
    %0 = vector.load %arg2[%c0, %c0_0, %c0_1] : memref<1x4x256xf32, #tpu.memory_space<vmem>>, vector<1x4x256xf32>
    %1 = vector.shape_cast %0 : vector<1x4x256xf32> to vector<4x256xf32>
    %cst = arith.constant 0.000000e+00 : f32
    %2 = vector.broadcast %cst : f32 to vector<4x256xf32>
    %3 = arith.maximumf %1, %2 : vector<4x256xf32>
    %c0_2 = arith.constant 0 : index
    %c0_3 = arith.constant 0 : index
    %4 = vector.load %arg5[%c0_2, %c0_3] : memref<3x256xf32, #tpu.memory_space<vmem>>, vector<3x256xf32>
    %c1_i32 = arith.constant 1 : i32
    %5 = tpu.dynamic_rotate %3 by %c1_i32 dim 1 : vector<4x256xf32>, i32 -> vector<4x256xf32>
    %6 = vector.extract_strided_slice %4 {offsets = [0, 0], sizes = [1, 256], strides = [1, 1]} : vector<3x256xf32> to vector<1x256xf32>
    %7 = vector.broadcast %6 : vector<1x256xf32> to vector<4x256xf32>
    %8 = arith.mulf %5, %7 : vector<4x256xf32>
    %c255_i32 = arith.constant 255 : i32
    %9 = tpu.dynamic_rotate %3 by %c255_i32 dim 1 : vector<4x256xf32>, i32 -> vector<4x256xf32>
    %10 = vector.extract_strided_slice %4 {offsets = [2, 0], sizes = [1, 256], strides = [1, 1]} : vector<3x256xf32> to vector<1x256xf32>
    %11 = vector.broadcast %10 : vector<1x256xf32> to vector<4x256xf32>
    %12 = arith.mulf %9, %11 : vector<4x256xf32>
    %13 = tpu.concatenate %8, %3, %12 in 0 : vector<4x256xf32>, vector<4x256xf32>, vector<4x256xf32> -> vector<12x256xf32>
    %14 = arith.truncf %13 : vector<12x256xf32> to vector<12x256xbf16>
    %c0_4 = arith.constant 0 : index
    %c0_5 = arith.constant 0 : index
    %15 = vector.load %arg3[%c0_4, %c0_5] : memref<8x12xbf16, #tpu.memory_space<vmem>>, vector<8x12xbf16>
    %cst_6 = arith.constant dense<0.000000e+00> : vector<8x256xf32>
    %16 = tpu.matmul %15, %14, %cst_6 {dimension_numbers = #tpu.dot_dimension_numbers<[1], [0], [0], [1], [0, 0, 1, 1], [], []>} : vector<8x12xbf16>, vector<12x256xbf16>, vector<8x256xf32> -> vector<8x256xf32>
    %c0_7 = arith.constant 0 : index
    %c0_8 = arith.constant 0 : index
    %17 = vector.load %arg4[%c0_7, %c0_8] : memref<8x1xf32, #tpu.memory_space<vmem>>, vector<8x1xf32>
    %18 = vector.broadcast %17 : vector<8x1xf32> to vector<8x256xf32>
    %19 = arith.addf %16, %18 : vector<8x256xf32>
    %c0_9 = arith.constant 0 : index
    %c0_10 = arith.constant 0 : index
    %c0_11 = arith.constant 0 : index
    %20 = vector.load %arg6[%c0_9, %c0_10, %c0_11] : memref<1x8x256xf32, #tpu.memory_space<vmem>>, vector<1x8x256xf32>
    %21 = vector.shape_cast %20 : vector<1x8x256xf32> to vector<8x256xf32>
    %22 = vector.shape_cast %19 : vector<8x256xf32> to vector<1x8x256xf32>
    tpu.vector_store %arg6[%c0_9, %c0_10, %c0_11], %22 {strides = array<i32>} : memref<1x8x256xf32, #tpu.memory_space<vmem>>, vector<1x8x256xf32>,
    return
  }
  func.func @transform_0(%arg0: i32, %arg1: i32) -> (i32, i32, i32) {
    %c0_i32 = arith.constant 0 : i32
    %c0_i32_0 = arith.constant 0 : i32
    return %arg0, %c0_i32, %arg1 : i32, i32, i32
  }
  func.func @transform_1(%arg0: i32, %arg1: i32) -> (i32, i32) {
    %c0_i32 = arith.constant 0 : i32
    %c0_i32_0 = arith.constant 0 : i32
    %c0_i32_1 = arith.constant 0 : i32
    return %c0_i32, %c0_i32_0 : i32, i32
  }
  func.func @transform_2(%arg0: i32, %arg1: i32) -> (i32, i32) {
    %c0_i32 = arith.constant 0 : i32
    %c0_i32_0 = arith.constant 0 : i32
    %c0_i32_1 = arith.constant 0 : i32
    return %c0_i32, %c0_i32_0 : i32, i32
  }
  func.func @transform_3(%arg0: i32, %arg1: i32) -> (i32, i32) {
    %c0_i32 = arith.constant 0 : i32
    %c0_i32_0 = arith.constant 0 : i32
    %c0_i32_1 = arith.constant 0 : i32
    return %c0_i32, %c0_i32_0 : i32, i32
  }
  func.func @transform_4(%arg0: i32, %arg1: i32) -> (i32, i32, i32) {
    %c0_i32 = arith.constant 0 : i32
    %c0_i32_0 = arith.constant 0 : i32
    return %arg0, %c0_i32, %arg1 : i32, i32, i32
  }
}

</mosaic_0001>

<bundles_post_ra>
// kernel: tpu_custom_call.1
= control target key start
LH: loop header
LB: loop body
LE: loop exit
PB: predicated region body
PF: predicated region fallthrough
CT: control target
= control target key end

     0   :  { %9 = vsyncpa [#allocation3], 0  ;;  %s878_s0 = inlined_call_operand.hbm [shape: f32[2,4,256], index: 0, kind: input, shape index: {}]   ;;  %s879_s1 = inlined_call_operand.vmem [shape: bf16[8,12], index: 1, kind: input, shape index: {}]   ;;  %s880_s2 = inlined_call_operand.vmem [shape: f32[8,1], index: 2, kind: input, shape index: {}]   ;;  %s881_s3 = inlined_call_operand.vmem [shape: f32[3,256], index: 3, kind: input, shape index: {}]   ;;  %s882_s4 = inlined_call_operand.hbm [shape: f32[2,8,256], index: 4, kind: output, shape index: {}]  }
   0x1   :  { %11 = vsyncpa [#allocation3 + $0x1], 0 }
   0x2   :  { %12 = vsyncpa [#allocation4], 0 }
   0x3   :  { %14 = vsyncpa [#allocation4 + $0x1], 0  ;;  %s696_s15 = smov 0   ;;  %s698_s16 = smov 0  }
   0x4   :  { %s700_s17 = smov 0   ;;  %s702_s18 = smov 0  }
   0x5   :  { %s704_s19 = smov 0   ;;  %s706_s20 = smov 0  }
   0x6 LB: > { %s467_s21 = sadd.s32 4294967295, %s664_s20   ;;  %s468_s22 = sadd.s32 4294967294, %s664_s20   ;;  %s664_s20 = sphi %s706_s20, %s20_s20   ;;  %s660_s19 = sphi %s704_s19, %s898_s19   ;;  %s656_s18 = sphi %s702_s18, %s897_s18   ;;  %s652_s17 = sphi %s700_s17, %s896_s17   ;;  %s648_s16 = sphi %s698_s16, %s895_s16   ;;  %s644_s15 = sphi %s696_s15, %s894_s15  }
   0x7   : > { %s32_s23 = sadd.s32 1, %s660_s19  ;;  %s41_s24 = sadd.s32 1, %s652_s17 }
   0x8   : > { %p34_p0 = scmp.ge.s32.totalorder %s32_s23, 2  ;;  %p48_p1 = scmp.ne.s32.totalorder %s652_s17, %s648_s16 }
   0x9   : > { %p49_p2 = scmp.eq.s32.totalorder %s664_s20, 0  ;;  %p54_p3 = scmp.ne.s32.totalorder %s648_s16, %s644_s15 }
   0xa   : > { %s900_s23 = smov (%p34_p0, %s32_s23), 0  ;;  %p55_p5 = scmp.eq.s32.totalorder %s467_s21, 0 }
   0xb   : > { %p737_p4 = por %p49_p2, %p48_p1  ;;  %s36_s26 = ssub.s32 %s660_s19, %s900_s23 }
   0xc   : > { %p143_p6 = scmp.eq.s32.totalorder %s467_s21, 1  ;;  %p39_p7 = scmp.eq.s32.totalorder %s36_s26, 0 }
   0xd   : > { %p743_p8 = por %p55_p5, %p54_p3  ;;  %p149_p10 = scmp.eq.s32.totalorder %s468_s22, 1 }
   0xe   : > { %p747_p9 = por %p143_p6, %p48_p1  ;;  %p498_p13 = scmp.lt.s32.totalorder %s664_s20, 2 }
   0xf   : > { %s752_s29 = scalar_select %p39_p7, %s652_s17, %s41_s24  }
  0x10   : > { %s886_s28 = scalar_select %p747_p9, 1, 0 }
  0x11   : > { %p754_p11 = por %p149_p10, %p54_p3  ;;  %s178_s5 = sand.u32 1, %s652_s17  }
  0x12   : > { %s471_s6 = sshll.u32 %s178_s5, 3  ;;  %s484_s7 = sshll.u32 %s660_s19, 7 }
  0x13   : > { %s887_s30 = scalar_select %p754_p11, 1, 0 }
  0x14   : > { %s765_s10 = scalar_lea.hbm %s878_s0, %s484_s7  ;;  %s182_s11 = scalar_lea.vmem [#allocation2], %s471_s6 }
  0x15   : > { %s192_s12 = sshll.u32 %s182_s11, 4  ;;  %p771_p0 = pnand %p498_p13, %p737_p4  ;;  %s767_s12 = int_to_ptr.vmem [resolvable:$true] %s192_s12 }
  0x16   : > { %s179_s14 = scalar_lea.sflag [#allocation3], %s178_s5  ;;  %s552_s21 = scalar_lea.hbm %s765_s10, 128 }
  0x17   : > { %p553_p3 = scmp.ne.s32.totalorder %s765_s10, %s552_s21  ;;  %p554_p5 = pneg %p771_p0 }
  0x18   : > { %s557_s25 = scalar_lea.hbm %s878_s0, 256  ;;  %p558_p4 = scmp.lt.u32.totalorder %s765_s10, %s878_s0 }
  0x19   : > { %p555_p6 = pnand %p554_p5, %p553_p3  ;;  %p559_p10 = scmp.lt.u32.totalorder %s557_s25, %s552_s21 }
  0x1a   : > { %p561_p12 = scmp.lt.u32.totalorder %s552_s21, %s765_s10 }
  0x1b   : > { %p556_p7 = pneg %p555_p6  ;;  %p560_p13 = por %p559_p10, %p558_p4 }
  0x1d   : > { %p562_p1 = por %p561_p12, %p560_p13 }
  0x1f   : > { %p563_p2 = pnand %p562_p1, %p556_p7 }
  0x21   : > { %566 = shalt.err (!%p563_p2)
}
  0x22   : > { %s567_s5 = scalar_lea.vmem %s767_s12, 128  ;;  %s666_s7 = smov [#allocation2]  }
  0x23   : > { %p568_p3 = scmp.ne.s32.totalorder %s767_s12, %s567_s5  ;;  %s572_s8 = sshll.u32 %s666_s7, 4  ;;  %s573_s8 = int_to_ptr.vmem [resolvable:$false] %s572_s8 }
  0x24   : > { %s574_s9 = scalar_lea.vmem %s573_s8, 256  ;;  %p575_p9 = scmp.lt.s32.totalorder %s767_s12, %s573_s8 }
  0x25   : > { %p570_p6 = pnand %p568_p3, %p554_p5  ;;  %p576_p4 = scmp.lt.s32.totalorder %s574_s9, %s567_s5 }
  0x27   : > { %p571_p11 = pneg %p570_p6  ;;  %p577_p10 = por %p576_p4, %p575_p9 }
  0x29   : > { %p578_p12 = pnand %p577_p10, %p571_p11 }
  0x2b   : > { %581 = shalt.err (!%p578_p12)
}
  0x2c   : > { %493 = dma.hbm_to_vmem [thread:$0]  (!%p771_p0), %s765_s10, 128, %s767_s12, %s179_s14  }
  0x2d   : > { %p889_p1 = scmp.lt.s32.totalorder %s664_s20, 3  ;;  %p890_p2 = scmp.ge.s32.totalorder %s664_s20, 1 }
  0x2f   : > { %p198_p5 = pnand %p890_p2, %p889_p1 }
  0x30   : > { %s807_s11 = sand.u32 (!%p198_p5), 1, %s648_s16  }
  0x31   : > { %201 = sbr.rel (%p198_p5) target bundleno = 418 (0x1a2), region = 36  ;;  %s475_s21 = sshll.u32 (!%p198_p5), %s807_s11, 3 }
  0x32   : > { %s204_s22 = scalar_lea.sflag (!%p198_p5), [#allocation3], %s807_s11  ;;  %s207_s24 = scalar_lea.vmem (!%p198_p5), [#allocation2], %s475_s21 }
  0x38   : > { %635 = dma.done.wait (%p743_p8), %s204_s22, 128  }
  0x39   : > { %637 = vsyncadd (%p743_p8), %s204_s22, 4294967168  ;;  %v235_v0 = vld [vmem:[%s207_s24] sm:$0xff]  ;;  %s667_s10 = smov 127   ;;  %s668_s12 = smov 1   ;;  %v669_v3 = vmov 0   ;;  %v245_v5 = vlaneseq  ;;  %vm300_vm2 = vcmask 1043456  }
  0x3a   : > { %v236_v1 = vmax.f32 %v235_v0, 0.0  ;;  %355 = vmatprep.mubr.bf16.mxu0 %v669_v3  ;;  %551 = vset.pattern.permute.xlu0 %v669_v3  ;;  %v306_v4 = vld [vmem:[%s880_s2] sm:$0xff]  ;;  %vm316_vm3 = vcmask 1045504   ;;  %vm312_vm4 = vcmask 97280   ;;  %s476_s5 = sshll.u32 %s807_s11, 4  ;;  %s485_s7 = sshll.u32 %s656_s18, 8 }
  0x3b   : > { %v252_v6 = vshrl.u32 %v245_v5, 7  ;;  %v237_v11 = vld [vmem:[%s881_s3] sm:$0x77]  ;;  %v246_v12 = vand.u32 127, %v245_v5  ;;  %s231_s8 = scalar_lea.vmem [#allocation5], %s476_s5  ;;  %s829_s24 = scalar_lea.hbm %s882_s4, %s485_s7 }
  0x3c   : > { %271 = vrot.lane.b32.xlu1 %v236_v1, %s667_s10  ;;  %241 = vrot.lane.b32.xlu0 %v236_v1, %s668_s12  ;;  %v239_v2 = vcombine.high %v236_v1, %v236_v1  ;;  %v298_v25 = vcombine.low %v236_v1, %v236_v1  ;;  %v305_v39 = vld [vmem:[%s879_s1] sm:$0xf]  ;;  %s383_s9 = sshll.u32 %s231_s8, 4  ;;  %s367_s18 = scalar_lea.sflag [#allocation4], %s807_s11  ;;  %s831_s9 = int_to_ptr.vmem [resolvable:$true] %s383_s9 }
  0x3d   : > { %v280_v7 = vsub.s32 2, %v252_v6  ;;  %v284_v8 = vsub.s32 6, %v252_v6  ;;  %v253_v9 = vsub.s32 0, %v252_v6  ;;  %v257_v10 = vsub.s32 4, %v252_v6  ;;  %p891_p9 = scmp.ne.s32.totalorder %s886_s28, 0 }
  0x3e   : > { %vm275_vm0 = vcmp.lt.s32.totalorder %v246_v12, 127  ;;  %vm247_vm1 = vcmp.lt.s32.totalorder %v246_v12, 1 }
  0x3f   : > { %v281_v13 = vrot.slane %v237_v11, %v280_v7  ;;  %v285_v14 = vrot.slane %v237_v11, %v284_v8  ;;  %v254_v15 = vrot.slane %v237_v11, %v253_v9  ;;  %v258_v16 = vrot.slane %v237_v11, %v257_v10 }
  0x40   : > { %273 = vrot.lane.b32.xlu1 %v239_v2, %s667_s10  ;;  %243 = vrot.lane.b32.xlu0 %v239_v2, %s668_s12  ;;  %s582_s10 = scalar_lea.vmem %s831_s9, 256  ;;  %s670_s12 = smov [#allocation5]  }
  0x41   : > { %v291_v19 = vrot.slane %v281_v13, %v280_v7  ;;  %v295_v20 = vrot.slane %v285_v14, %v280_v7  ;;  %v264_v21 = vrot.slane %v254_v15, %v253_v9  ;;  %v268_v22 = vrot.slane %v258_v16, %v253_v9  ;;  %p583_p8 = scmp.ne.s32.totalorder %s831_s9, %s582_s10  ;;  %s586_s13 = sshll.u32 %s670_s12, 4  ;;  %s587_s13 = int_to_ptr.vmem [resolvable:$false] %s586_s13 }
  0x42   : > { %s588_s14 = scalar_lea.vmem %s587_s13, 512  ;;  %p589_p7 = scmp.lt.s32.totalorder %s831_s9, %s587_s13 }
  0x43   : > { %p584_p11 = pnand %p583_p8, %p891_p9  ;;  %p590_p13 = scmp.lt.s32.totalorder %s588_s14, %s582_s10 }
  0x44   : > { %309 = vperm.xlu0 %551, %v306_v4  }
  0x45   : > { %p585_p0 = pneg %p584_p11  ;;  %p591_p3 = por %p590_p13, %p589_p7 }
  0x47   : > { %p592_p6 = pnand %p591_p3, %p585_p0 }
  0xae   : > { %v272_v17 = vpop.permute.xlu1 %271  ;;  %v242_v18 = vpop.permute.xlu0 %241 }
  0xb2   : > { %v274_v23 = vpop.permute.xlu1 %273  ;;  %v244_v24 = vpop.permute.xlu0 %243 }
  0xb3   : > { %v276_v26 = vsel %vm275_vm0, %v272_v17, %v274_v23  ;;  %v277_v27 = vsel %vm275_vm0, %v274_v23, %v272_v17  ;;  %v248_v28 = vsel %vm247_vm1, %v242_v18, %v244_v24  ;;  %v249_v29 = vsel %vm247_vm1, %v244_v24, %v242_v18 }
  0xb4   : > { %v296_v30 = vmul.f32 %v291_v19, %v276_v26  ;;  %v297_v31 = vmul.f32 %v295_v20, %v277_v27  ;;  %v269_v32 = vmul.f32 %v264_v21, %v249_v29  ;;  %v270_v33 = vmul.f32 %v268_v22, %v248_v28 }
  0xb6   : > { %v302_v34 = vsel %vm300_vm2, %v270_v33, %v236_v1  ;;  %v301_v35 = vsel %vm300_vm2, %v269_v32, %v298_v25 }
  0xb7   : > { %v304_v36 = vpack.c.bf16 %v297_v31, %v302_v34  ;;  %v303_v37 = vpack.c.bf16 %v296_v30, %v301_v35 }
  0xb9   : > { %477 = vmatprep.subr.msk.bf16.mxu0 %vm316_vm3, %v304_v36  ;;  %v318_v38 = vsel %vm316_vm3, %v303_v37, 0 }
  0xba   : > { %324 = vmatpush1.bf16.msra.mxu0 %v318_v38 }
  0xbd   : > { %478 = vmatmul.mubr.msk.bf16.vlgmr.msra.gmra.mrb[0].mxu0 %vm312_vm4, %v305_v39 }
  0xc3   : > { %v310_v40 = vpop.permute.xlu0 %309 }
 0x190   : > { %v357_v41 = vpop.f32.mrb[0].mxu0 }
 0x191   : > { %v358_v42 = vadd.f32 %v357_v41, %v310_v40  ;;  %v359_v43 = vpop.f32.mrb[1].mxu0 }
 0x192   : > { %v360_v44 = vadd.f32 %v359_v43, %v310_v40  ;;  %v361_v45 = vpop.f32.mrb[2].mxu0 }
 0x193   : > { %364 = vst [vmem:[%s231_s8] sm:$0xff] %v358_v42  ;;  %v362_v46 = vpop.f32.mrb[3].mxu0 }
 0x194   : > { %365 = vst [vmem:[%s231_s8 + $0x8] sm:$0xff] %v360_v44 }
 0x195   : > { %595 = shalt.err (!%p592_p6)
}
 0x196   : > { %s596_s11 = scalar_lea.hbm %s829_s24, 256  ;;  %s600_s26 = scalar_lea.hbm %s882_s4, 512 }
 0x197   : > { %p597_p4 = scmp.ne.s32.totalorder %s829_s24, %s596_s11  ;;  %p601_p1 = scmp.lt.u32.totalorder %s829_s24, %s882_s4 }
 0x198   : > { %p602_p2 = scmp.lt.u32.totalorder %s600_s26, %s596_s11  ;;  %p604_p8 = scmp.lt.u32.totalorder %s596_s11, %s829_s24 }
 0x199   : > { %p598_p10 = pnand %p597_p4, %p891_p9 }
 0x19a   : > { %p603_p5 = por %p602_p2, %p601_p1 }
 0x19b   : > { %p599_p12 = pneg %p598_p10 }
 0x19c   : > { %p605_p11 = por %p604_p8, %p603_p5 }
 0x19e   : > { %p606_p0 = pnand %p605_p11, %p599_p12 }
 0x1a0   : > { %609 = shalt.err (!%p606_p0)
}
 0x1a1   : > { %488 = dma.vmem_to_hbm [thread:$0]  (%p891_p9), %s831_s9, 256, %s829_s24, %s367_s18  }
 0x1a2 PF: > { %s395_s7 = sand.u32 1, %s644_s15   ;;  %p892_p7 = scmp.ne.s32.totalorder %s887_s30, 0 }
 0x1a3   : > { %p893_p13 = scmp.ge.s32.totalorder %s664_s20, 2  ;;  %s396_s8 = scalar_lea.sflag [#allocation4], %s395_s7 }
 0x1a5   : > { %p495_p3 = pnand %p893_p13, %p892_p7 }
 0x1a7   : > { %639 = dma.done.wait (!%p495_p3), %s396_s8, 256  }
 0x1a8   : > { %641 = vsyncadd (!%p495_p3), %s396_s8, 4294967040  ;;  %s20_s20 = sadd.s32 1, %s664_s20   ;;  %s894_s15 = smov %s648_s16 }
 0x1a9   : > { %p17_p6 = scmp.ge.s32.totalorder %s20_s20, 4   ;;  %s895_s16 = smov %s652_s17 }
 0x1aa   : > { %s896_s17 = smov %s752_s29  ;;  %s897_s18 = smov %s660_s19 }
 0x1ab   : > { %s898_s19 = smov %s900_s23  ;;  %19 = sbr.rel (!%p17_p6) target bundleno = 6 (0x6), region = 81 }
 0x1b2   :  { %401 = vsyncpa [#allocation3], 1 }
 0x1b3   :  { %403 = vsyncpa [#allocation3 + $0x1], 1 }
 0x1b4   :  { %404 = vsyncpa [#allocation4], 1 }
 0x1b5   :  { %406 = vsyncpa [#allocation4 + $0x1], 1 }

</bundles_post_ra>
